<compile_context>
chip_gen: v7x
topology: tpu7x:2x2x1
jax: 0.10.0
libtpu: 0.0.40
codegen_flags: <defaults>
</compile_context>

<pallas_src>
import jax
import jax.numpy as jnp
from jax.experimental import pallas as pl
from jax.experimental.pallas import tpu as pltpu

NS = 8
IN_DIM = 3 * NS            # 24
HID = 32
Z_DIM = 4
HEAD_DIM = 2 * Z_DIM       # mu | logvar (8)
IN_PACK = IN_DIM + Z_DIM   # x | eps packed along features (28)
OUT_DIM = HEAD_DIM + Z_DIM # mu | logvar | z packed along features (12)


def _round_up(x, m):
    return ((x + m - 1) // m) * m


def encoder_kernel(xe_ref, w1_ref, b1_ref, wh_ref, bh_ref, out_ref):
    # Feature-major: last dim of every tensor is the (lane-dense) batch tile.
    x = xe_ref[:IN_DIM, :]                        # [IN_DIM, Tb]
    eps = xe_ref[IN_DIM:, :]                      # [Z_DIM,  Tb]

    # fc1 + ReLU
    h1 = jnp.dot(w1_ref[...], x, preferred_element_type=jnp.float32) + b1_ref[...]
    h1 = jnp.maximum(h1, 0.0)                     # [HID, Tb]

    # fused heads: one MXU pass producing [mu ; logvar] along sublanes
    head = jnp.dot(wh_ref[...], h1, preferred_element_type=jnp.float32) + bh_ref[...]
    mu = head[:Z_DIM, :]                          # [Z_DIM, Tb]
    logvar = head[Z_DIM:, :]                      # [Z_DIM, Tb]

    # reparameterization
    z = mu + jnp.exp(logvar * 0.5) * eps          # [Z_DIM, Tb]

    # packed output (mu | logvar | z): two sublane-aligned, lane-dense stores
    out_ref[:HEAD_DIM, :] = head
    out_ref[HEAD_DIM:, :] = z


def _choose_tile_b(B, *, min_steps=4, max_tile=1024):
    """Batch lane-tile: multiple of 128; >= min_steps grid steps for large B
    (v7x: both TCs get >=2 steps so DMA is double-buffered); capped so padding
    waste stays < 1 tile and per-step overhead stays negligible on v5e/v6e."""
    tile = _round_up(pl.cdiv(B, min_steps), 128)
    return max(128, min(max_tile, tile))


def encoder_forward(x, params, eps):
    """x: [B, IN_DIM], eps: [B, Z_DIM]. Returns (z, mu, logvar), each [B, Z_DIM] f32."""
    w1, b1, w21, b21, w22, b22 = params           # PyTorch layout: W [out, in]
    wh = jnp.concatenate([w21, w22], axis=0)      # [HEAD_DIM, HID]
    bh = jnp.concatenate([b21, b22], axis=0)      # [HEAD_DIM]

    B = x.shape[0]
    tile_b = _choose_tile_b(B)
    padded_b = _round_up(B, tile_b)
    grid = (padded_b // tile_b,)

    # single streamed input: x|eps packed along features, batch in lanes
    xe = jnp.concatenate([x, eps], axis=1)        # [B, IN_PACK]
    if padded_b != B:
        xe = jnp.pad(xe, ((0, padded_b - B), (0, 0)))
    xe_t = xe.T                                   # [IN_PACK, padded_b]

    flops = 2 * padded_b * (IN_DIM * HID + HID * HEAD_DIM) + 4 * padded_b * Z_DIM
    bytes_accessed = 4 * (
        padded_b * (IN_PACK + OUT_DIM)
        + HID * IN_DIM + HID + HEAD_DIM * HID + HEAD_DIM
    )

    packed = pl.pallas_call(
        encoder_kernel,
        out_shape=jax.ShapeDtypeStruct((OUT_DIM, padded_b), jnp.float32),
        grid_spec=pltpu.PrefetchScalarGridSpec(
            num_scalar_prefetch=0,
            grid=grid,
            in_specs=[
                pl.BlockSpec((IN_PACK, tile_b), lambda i: (0, i)),  # x|eps stream
                pl.BlockSpec((HID, IN_DIM), lambda i: (0, 0)),      # W1 (resident)
                pl.BlockSpec((HID, 1), lambda i: (0, 0)),           # b1
                pl.BlockSpec((HEAD_DIM, HID), lambda i: (0, 0)),    # W_head
                pl.BlockSpec((HEAD_DIM, 1), lambda i: (0, 0)),      # b_head
            ],
            out_specs=pl.BlockSpec((OUT_DIM, tile_b), lambda i: (0, i)),
        ),
        compiler_params=pltpu.CompilerParams(
            dimension_semantics=("parallel",),     # v7x: shard batch tiles over 2 TCs
        ),
        cost_estimate=pl.CostEstimate(
            flops=flops,
            transcendentals=padded_b * Z_DIM,
            bytes_accessed=bytes_accessed,
        ),
    )(xe_t, w1, b1.reshape(HID, 1), wh, bh.reshape(HEAD_DIM, 1))

    mu = packed[:Z_DIM, :B].T
    logvar = packed[Z_DIM:HEAD_DIM, :B].T
    z = packed[HEAD_DIM:, :B].T
    return z, mu, logvar


def init_params(key):
    """Deterministic init mimicking PyTorch Linear default (U[-1/sqrt(fan_in), +]).
    Weights stored PyTorch-style as [out, in] (exactly what the feature-major
    kernel needs for W @ x^T)."""
    def linear(k, fan_in, fan_out):
        kw, kb = jax.random.split(k)
        bound = 1.0 / jnp.sqrt(fan_in)
        w = jax.random.uniform(kw, (fan_out, fan_in), jnp.float32, -bound, bound)
        b = jax.random.uniform(kb, (fan_out,), jnp.float32, -bound, bound)
        return w, b

    k1, k2, k3 = jax.random.split(key, 3)
    w1, b1 = linear(k1, IN_DIM, HID)
    w21, b21 = linear(k2, HID, Z_DIM)
    w22, b22 = linear(k3, HID, Z_DIM)
    return (w1, b1, w21, b21, w22, b22)


def reference_forward(x, params, eps):
    """Pure-JAX reference (batch-major, like the PyTorch module)."""
    w1, b1, w21, b21, w22, b22 = params
    h1 = jnp.maximum(x @ w1.T + b1, 0.0)
    mu = h1 @ w21.T + b21
    logvar = h1 @ w22.T + b22
    z = mu + jnp.exp(logvar * 0.5) * eps
    return z, mu, logvar


if __name__ == "__main__":
    key = jax.random.PRNGKey(0)
    k_x, k_p, k_eps, k_x2, k_eps2 = jax.random.split(key, 5)
    params = init_params(k_p)

    # --- small-batch check (B = 8, single grid step) ---
    B = 8
    x = jax.random.normal(k_x, (B, IN_DIM), jnp.float32)
    eps = jax.random.normal(k_eps, (B, Z_DIM), jnp.float32)

    z, mu, logvar = encoder_forward(x, params, eps)
    jax.block_until_ready((z, mu, logvar))

    z_ref, mu_ref, lv_ref = reference_forward(x, params, eps)
    assert jnp.allclose(z, z_ref, atol=1e-5), "z mismatch (B=8)"
    assert jnp.allclose(mu, mu_ref, atol=1e-5), "mu mismatch (B=8)"
    assert jnp.allclose(logvar, lv_ref, atol=1e-5), "logvar mismatch (B=8)"

    # --- larger, non-multiple batch: exercises multi-step grid + lane padding ---
    B2 = 2000
    x2 = jax.random.normal(k_x2, (B2, IN_DIM), jnp.float32)
    eps2 = jax.random.normal(k_eps2, (B2, Z_DIM), jnp.float32)

    z2, mu2, lv2 = encoder_forward(x2, params, eps2)
    jax.block_until_ready((z2, mu2, lv2))

    z2_ref, mu2_ref, lv2_ref = reference_forward(x2, params, eps2)
    assert jnp.allclose(z2, z2_ref, atol=1e-5), "z mismatch (B=2000)"
    assert jnp.allclose(mu2, mu2_ref, atol=1e-5), "mu mismatch (B=2000)"
    assert jnp.allclose(lv2, lv2_ref, atol=1e-5), "logvar mismatch (B=2000)"

    print("KERNEL_OK")
</pallas_src>

<mosaic_0001>
module attributes {stable_mosaic.version = 11 : i64} {
  func.func @encoder_kernel(%arg0: i32, %arg1: memref<28x128xf32, #tpu.memory_space<vmem>>, %arg2: memref<32x24xf32, #tpu.memory_space<vmem>>, %arg3: memref<32x1xf32, #tpu.memory_space<vmem>>, %arg4: memref<8x32xf32, #tpu.memory_space<vmem>>, %arg5: memref<8x1xf32, #tpu.memory_space<vmem>>, %arg6: memref<12x128xf32, #tpu.memory_space<vmem>>) attributes {dimension_semantics = [#tpu.dimension_semantics<parallel>], iteration_bounds = array<i64: 1>, scalar_prefetch = 0 : i64, scratch_operands = 0 : i64, tpu.core_type = #tpu.core_type<tc>, window_params = [{transform_indices = @transform_0, window_bounds = array<i64: 28, 128>}, {pipeline_mode = #tpu.pipeline_mode<synchronous>, transform_indices = @transform_1, window_bounds = array<i64: 32, 24>}, {pipeline_mode = #tpu.pipeline_mode<synchronous>, transform_indices = @transform_2, window_bounds = array<i64: 32, 1>}, {pipeline_mode = #tpu.pipeline_mode<synchronous>, transform_indices = @transform_3, window_bounds = array<i64: 8, 32>}, {pipeline_mode = #tpu.pipeline_mode<synchronous>, transform_indices = @transform_4, window_bounds = array<i64: 8, 1>}, {transform_indices = @transform_5, window_bounds = array<i64: 12, 128>}]} {
    %c0 = arith.constant 0 : index
    %c0_0 = arith.constant 0 : index
    %0 = vector.load %arg1[%c0, %c0_0] : memref<28x128xf32, #tpu.memory_space<vmem>>, vector<24x128xf32>
    %c24 = arith.constant 24 : index
    %c0_1 = arith.constant 0 : index
    %1 = vector.load %arg1[%c24, %c0_1] : memref<28x128xf32, #tpu.memory_space<vmem>>, vector<4x128xf32>
    %c0_2 = arith.constant 0 : index
    %c0_3 = arith.constant 0 : index
    %2 = vector.load %arg2[%c0_2, %c0_3] : memref<32x24xf32, #tpu.memory_space<vmem>>, vector<32x24xf32>
    %cst = arith.constant dense<0.000000e+00> : vector<32x128xf32>
    %3 = tpu.matmul %2, %0, %cst {dimension_numbers = #tpu.dot_dimension_numbers<[1], [0], [0], [1], [0, 0, 1, 1], [], []>} : vector<32x24xf32>, vector<24x128xf32>, vector<32x128xf32> -> vector<32x128xf32>
    %c0_4 = arith.constant 0 : index
    %c0_5 = arith.constant 0 : index
    %4 = vector.load %arg3[%c0_4, %c0_5] : memref<32x1xf32, #tpu.memory_space<vmem>>, vector<32x1xf32>
    %5 = vector.broadcast %4 : vector<32x1xf32> to vector<32x128xf32>
    %6 = arith.addf %3, %5 : vector<32x128xf32>
    %cst_6 = arith.constant 0.000000e+00 : f32
    %7 = vector.broadcast %cst_6 : f32 to vector<32x128xf32>
    %8 = arith.maximumf %6, %7 : vector<32x128xf32>
    %c0_7 = arith.constant 0 : index
    %c0_8 = arith.constant 0 : index
    %9 = vector.load %arg4[%c0_7, %c0_8] : memref<8x32xf32, #tpu.memory_space<vmem>>, vector<8x32xf32>
    %cst_9 = arith.constant dense<0.000000e+00> : vector<8x128xf32>
    %10 = tpu.matmul %9, %8, %cst_9 {dimension_numbers = #tpu.dot_dimension_numbers<[1], [0], [0], [1], [0, 0, 1, 1], [], []>} : vector<8x32xf32>, vector<32x128xf32>, vector<8x128xf32> -> vector<8x128xf32>
    %c0_10 = arith.constant 0 : index
    %c0_11 = arith.constant 0 : index
    %11 = vector.load %arg5[%c0_10, %c0_11] : memref<8x1xf32, #tpu.memory_space<vmem>>, vector<8x1xf32>
    %12 = vector.broadcast %11 : vector<8x1xf32> to vector<8x128xf32>
    %13 = arith.addf %10, %12 : vector<8x128xf32>
    %14 = vector.extract_strided_slice %13 {offsets = [0, 0], sizes = [4, 128], strides = [1, 1]} : vector<8x128xf32> to vector<4x128xf32>
    %15 = vector.extract_strided_slice %13 {offsets = [4, 0], sizes = [4, 128], strides = [1, 1]} : vector<8x128xf32> to vector<4x128xf32>
    %cst_12 = arith.constant 5.000000e-01 : f32
    %16 = vector.broadcast %cst_12 : f32 to vector<4x128xf32>
    %17 = arith.mulf %15, %16 : vector<4x128xf32>
    %18 = math.exp %17 : vector<4x128xf32>
    %19 = arith.mulf %18, %1 : vector<4x128xf32>
    %20 = arith.addf %14, %19 : vector<4x128xf32>
    %c0_13 = arith.constant 0 : index
    %c0_14 = arith.constant 0 : index
    %21 = vector.load %arg6[%c0_13, %c0_14] : memref<12x128xf32, #tpu.memory_space<vmem>>, vector<8x128xf32>
    tpu.vector_store %arg6[%c0_13, %c0_14], %13 {strides = array<i32>} : memref<12x128xf32, #tpu.memory_space<vmem>>, vector<8x128xf32>,
    %c8 = arith.constant 8 : index
    %c0_15 = arith.constant 0 : index
    %22 = vector.load %arg6[%c8, %c0_15] : memref<12x128xf32, #tpu.memory_space<vmem>>, vector<4x128xf32>
    tpu.vector_store %arg6[%c8, %c0_15], %20 {strides = array<i32>} : memref<12x128xf32, #tpu.memory_space<vmem>>, vector<4x128xf32>,
    return
  }
  func.func @transform_0(%arg0: i32) -> (i32, i32) {
    %c0_i32 = arith.constant 0 : i32
    %c0_i32_0 = arith.constant 0 : i32
    return %c0_i32, %arg0 : i32, i32
  }
  func.func @transform_1(%arg0: i32) -> (i32, i32) {
    %c0_i32 = arith.constant 0 : i32
    %c0_i32_0 = arith.constant 0 : i32
    %c0_i32_1 = arith.constant 0 : i32
    return %c0_i32, %c0_i32_0 : i32, i32
  }
  func.func @transform_2(%arg0: i32) -> (i32, i32) {
    %c0_i32 = arith.constant 0 : i32
    %c0_i32_0 = arith.constant 0 : i32
    %c0_i32_1 = arith.constant 0 : i32
    return %c0_i32, %c0_i32_0 : i32, i32
  }
  func.func @transform_3(%arg0: i32) -> (i32, i32) {
    %c0_i32 = arith.constant 0 : i32
    %c0_i32_0 = arith.constant 0 : i32
    %c0_i32_1 = arith.constant 0 : i32
    return %c0_i32, %c0_i32_0 : i32, i32
  }
  func.func @transform_4(%arg0: i32) -> (i32, i32) {
    %c0_i32 = arith.constant 0 : i32
    %c0_i32_0 = arith.constant 0 : i32
    %c0_i32_1 = arith.constant 0 : i32
    return %c0_i32, %c0_i32_0 : i32, i32
  }
  func.func @transform_5(%arg0: i32) -> (i32, i32) {
    %c0_i32 = arith.constant 0 : i32
    %c0_i32_0 = arith.constant 0 : i32
    return %c0_i32, %arg0 : i32, i32
  }
}

</mosaic_0001>

<bundles_post_ra>
// kernel: tpu_custom_call.1
= control target key start
LH: loop header
LB: loop body
LE: loop exit
PB: predicated region body
PF: predicated region fallthrough
CT: control target
= control target key end

     0   :  { %vm53_vm0 = vcmask 195584   ;;  %v350_v4 = vmov 0   ;;  %s445_s0 = inlined_call_operand.vmem [shape: f32[28,128], index: 0, kind: input, shape index: {}]   ;;  %s446_s1 = inlined_call_operand.vmem [shape: f32[32,24], index: 1, kind: input, shape index: {}]   ;;  %s447_s2 = inlined_call_operand.vmem [shape: f32[32,1], index: 2, kind: input, shape index: {}]   ;;  %s448_s3 = inlined_call_operand.vmem [shape: f32[8,32], index: 3, kind: input, shape index: {}]   ;;  %s449_s4 = inlined_call_operand.vmem [shape: f32[8,1], index: 4, kind: input, shape index: {}]   ;;  %s450_s5 = inlined_call_operand.hbm [shape: f32[12,128], index: 5, kind: output, shape index: {}]  }
   0x1   :  { %v21_v0 = vld [vmem:[%s445_s0] sm:$0xff]  ;;  %v22_v1 = vld [vmem:[%s445_s0 + $0x8] sm:$0xff]  ;;  %322 = vset.pattern.permute.xlu0 %v350_v4  ;;  %323 = vset.pattern.permute.xlu1 %v350_v4  ;;  %v23_v5 = vld [vmem:[%s445_s0 + $0x10] sm:$0xff] }
   0x2   :  { %v305_v2 = vpack.c.bf16 %v22_v1, %v21_v0  ;;  %v25_v3 = vld [vmem:[%s446_s1] sm:$0xff]  ;;  %v31_v7 = vld [vmem:[%s447_s2 + $0x10] sm:$0xff]  ;;  %v30_v8 = vld [vmem:[%s447_s2 + $0x8] sm:$0xff] }
   0x3   :  { %288 = vmatprep.mubr.msk.f32.mxu0 %vm53_vm0, %v25_v3  ;;  %v29_v6 = vld [vmem:[%s447_s2] sm:$0xff]  ;;  %45 = vperm.xlu1 %323, %v31_v7  }
   0x4   :  { %306 = vmatprep.subr.bf16.mxu0 %v305_v2  ;;  %35 = vperm.xlu0 %322, %v29_v6  }
   0x5   :  { %308 = vmatpush3.bf16.msra.mxu0 %v305_v2 }
   0x6   :  { %10 = vsyncpa [#allocation3], 0  ;;  %286 = vmatprep.subr.mxu0 %v23_v5  ;;  %v32_v9 = vld [vmem:[%s447_s2 + $0x18] sm:$0xff]  ;;  %v26_v10 = vld [vmem:[%s446_s1 + $0x8] sm:$0xff]  ;;  %v351_v14 = vmov 0.0|0.0   ;;  %vm352_vm1 = vmmov 0  }
   0x7   :  { %v27_v11 = vld [vmem:[%s446_s1 + $0x10] sm:$0xff]  ;;  %v156_v12 = vld [vmem:[%s449_s4] sm:$0xff]  ;;  %50 = vperm.xlu1 %323, %v32_v9   ;;  %v28_v13 = vld [vmem:[%s446_s1 + $0x18] sm:$0xff]  ;;  %309 = vmatprep.subr.bf16.mxu1 %v351_v14  ;;  %v353_v15 = vmov 0.0   ;;  %vm162_vm2 = vcmask 261120   ;;  %s354_s18 = smov [#allocation2]  }
   0x8   :  { %40 = vperm.xlu0 %322, %v30_v8   ;;  %302 = vmatprep.mubr.msk.f32.mxu1 %vm352_vm1, %v353_v15  ;;  %v155_v34 = vld [vmem:[%s448_s3] sm:$0xff]  ;;  %v24_v41 = vld [vmem:[%s445_s0 + $0x18] sm:$0xf]  ;;  %s254_s19 = sshll.u32 %s354_s18, 4  ;;  %s255_s19 = int_to_ptr.vmem [resolvable:$true] %s254_s19 }
   0x9   :  { %287 = vmatpush3.msra.mxu0 %v23_v5  ;;  %v240_v42 = vrot.slane %v24_v41, 4  ;;  %s326_s3 = scalar_lea.vmem %s255_s19, 256  ;;  %p331_p1 = scmp.lt.s32.totalorder %s255_s19, %s255_s19 }
   0xa   :  { %289 = vmatmul.mubr.msk.f32.vlgmr.msra.gmra.mrb[0].mxu0 %vm53_vm0, %v26_v10  ;;  %p327_p0 = scmp.ne.s32.totalorder %s255_s19, %s326_s3  ;;  %p332_p2 = scmp.lt.s32.totalorder %s326_s3, %s326_s3 }
   0xb   :  { %291 = vmatprep.mubr.msk.f32.mxu0 %vm53_vm0, %v27_v11 }
   0xc   :  { %159 = vperm.xlu0 %322, %v156_v12   ;;  %p333_p3 = por %p332_p2, %p331_p1 }
   0xe   :  { %292 = vmatmul.mubr.msk.f32.gmra.mrb[2].mxu0 %vm53_vm0, %v28_v13  ;;  %p334_p4 = pnand %p333_p3, %p327_p0 }
  0x82   :  { %v46_v17 = vpop.permute.xlu1 %45 }
  0x83   :  { %v36_v16 = vpop.permute.xlu0 %35 }
  0x86   :  { %v51_v24 = vpop.permute.xlu1 %50 }
  0x87   :  { %v41_v18 = vpop.permute.xlu0 %40 }
  0x8b   :  { %v160_v35 = vpop.permute.xlu0 %159 }
  0xdd   :  { %v290_v19 = vpop.f32.mrb[0].mxu0 }
  0xde   :  { %v138_v20 = vadd.f32 %v290_v19, %v41_v18  ;;  %v132_v21 = vpop.f32.mrb[1].mxu0 }
  0xdf   :  { %v133_v22 = vadd.f32 %v132_v21, %v36_v16 }
  0xe0   :  { %v152_v23 = vmax.f32 %v138_v20, 0.0 }
  0xe1   :  { %v151_v25 = vmax.f32 %v133_v22, 0.0  ;;  %v293_v26 = vpop.f32.mrb[2].mxu0 }
  0xe2   :  { %v148_v27 = vadd.f32 %v293_v26, %v51_v24  ;;  %v142_v28 = vpop.f32.mrb[3].mxu0 }
  0xe3   :  { %v143_v29 = vadd.f32 %v142_v28, %v46_v17  ;;  %v310_v30 = vpack.c.bf16 %v152_v23, %v151_v25 }
  0xe4   :  { %v154_v31 = vmax.f32 %v148_v27, 0.0 }
  0xe5   :  { %v153_v32 = vmax.f32 %v143_v29, 0.0  ;;  %311 = vmatpush3.bf16.msra.mxu1 %v310_v30 }
  0xe6   :  { %312 = vmatprep.subr.bf16.mxu1 %v351_v14 }
  0xe7   :  { %v313_v33 = vpack.c.bf16 %v154_v31, %v153_v32 }
  0xe9   :  { %314 = vmatpush3.bf16.msra.mxu1 %v313_v33 }
  0xec   :  { %303 = vmatmul.mubr.msk.f32.vlgmr.msra.gmra.mrb[0].mxu1 %vm162_vm2, %v155_v34 }
 0x1bf   :  { %v232_v36 = vpop.f32.mrb[0].mxu1 }
 0x1c0   :  { %v233_v37 = vadd.f32 %v232_v36, %v160_v35  ;;  %v304_v38 = vpop.f32.mrb[1].mxu1 }
 0x1c2   :  { %v236_v39 = vmul.f32 0.5, %v233_v37  ;;  %247 = vst [vmem:[#allocation2] sm:$0xff] %v233_v37 }
 0x1c4   :  { %v237_v40 = vmul.f32 1.442695, %v236_v39 }
 0x1c6   :  { %324 = vpow2.f32 %v237_v40 }
 0x1d0   :  { %v325_v43 = vpop.eup %324 }
 0x1d1   :  { %v242_v44 = vmul.f32 %v325_v43, %v240_v42 }
 0x1d3   :  { %v244_v45 = vrot.slane %v242_v44, 4 }
 0x1d5   :  { %v246_v46 = vadd.f32 %v244_v45, %v233_v37 }
 0x1d7   :  { %248 = vst [vmem:[#allocation2 + $0x8] sm:$0xf] %v246_v46 }
 0x1d8   :  { %337 = shalt.err (!%p334_p4)
}
 0x1d9   :  { %s338_s0 = scalar_lea.hbm %s450_s5, 256 }
 0x1da   :  { %p339_p5 = scmp.ne.s32.totalorder %s450_s5, %s338_s0  ;;  %p342_p6 = scmp.lt.u32.totalorder %s338_s0, %s450_s5 }
 0x1dc   :  { %p344_p7 = pnand %p342_p6, %p339_p5 }
 0x1de   :  { %347 = shalt.err (!%p344_p7)
}
 0x1df   :  { %s355_s26 = smov 128   ;;  %s356_s27 = smov 8  }
 0x1e0   :  { %260 = dma.vmem_to_hbm [thread:$0]  %s255_s19, 256, %s450_s5, [#allocation3], %s355_s26, %s355_s26, %s356_s27  }
 0x1e1   :  { %348 = dma.done.wait [#allocation3], 256  }
 0x1e2   :  { %349 = vsyncadd [#allocation3], 4294967040 }
 0x1e3   :  { %264 = vsyncpa [#allocation3], 1 }

</bundles_post_ra>
